<compile_context>
chip_gen: v6e
topology: v6e:2x2x1
jax: 0.10.0
libtpu: 0.0.40
codegen_flags: <defaults>
</compile_context>

<pallas_src>
import functools

import jax
import jax.numpy as jnp
import numpy as np
from jax.experimental import pallas as pl
from jax.experimental.pallas import tpu as pltpu


def _loss_kernel(x_ref, t_ref, lossmap_ref, *, epsilon):
    x = x_ref[0].astype(jnp.float32)            # [C, TH, W]
    t = t_ref[0]                                # [TH, W] int32
    c = x.shape[0]

    # numerically-stable logsumexp along the class (major) axis:
    # reductions over axis 0 are elementwise combines of C [TH, W] slabs (VPU).
    m = jnp.max(x, axis=0)                      # [TH, W]
    z = x - m[None, :, :]                       # [C, TH, W]
    lse = jnp.log(jnp.sum(jnp.exp(z), axis=0))  # [TH, W]

    # one-hot gather of the target class, fused with the smoothing term.
    # NOTE: assumes target values lie in [0, C) (ignore_index=None contract);
    # out-of-range targets are not checked (PyTorch gather would error).
    cls = jax.lax.broadcasted_iota(jnp.int32, x.shape, 0)      # [C, TH, W]
    onehot = (cls == t[None, :, :]).astype(jnp.float32)

    eps_i = epsilon / c
    w = (1.0 - epsilon) * onehot + eps_i        # sums to 1 along class axis
    # lossmap = (1-eps)*nll + (eps/C)*smooth  ==  lse - sum(z*w, class)
    lossmap_ref[0] = lse - jnp.sum(z * w, axis=0)               # [TH, W]


def _pick_tile_h(C, H, W, x_itemsize, budget_bytes=12 << 20):
    """Largest TH (divisor of H, multiple of 8 or == H) whose double-buffered
    blocks fit comfortably inside the default scoped-VMEM budget on all
    generations (v5e 16 MiB default scoped is the binding one)."""

    def block_bytes(th):
        x_blk = C * th * W * x_itemsize           # logits block
        aux = th * W * (4 + 4)                    # target (i32) + lossmap (f32)
        return 2 * (x_blk + aux)                  # double-buffered

    if block_bytes(H) <= budget_bytes:
        return H                                  # whole image height per step
    best = None
    for th in range(8, H, 8):
        if H % th == 0 and block_bytes(th) <= budget_bytes:
            best = th
    if best is not None:
        return best
    return 8 if H % 8 == 0 else H


def hard_balanced_loss(logits_nchw, target_bhw, smooth_factor=0.05):
    """Returns (loss_scalar, lossmap[B,H,W], wlossmap[B,H,W]) matching the
    PyTorch forward() path where no pred_statistic result exists
    (weight=None, ignore_index=None, reduction='mean')."""
    B, C, H, W = logits_nchw.shape
    x_itemsize = jnp.dtype(logits_nchw.dtype).itemsize
    TH = _pick_tile_h(C, H, W, x_itemsize)
    assert H % TH == 0, "tile height must divide H"

    kernel = functools.partial(_loss_kernel, epsilon=float(smooth_factor))
    grid = (B, H // TH)

    lossmap = pl.pallas_call(
        kernel,
        out_shape=jax.ShapeDtypeStruct((B, H, W), jnp.float32),
        grid_spec=pltpu.PrefetchScalarGridSpec(
            num_scalar_prefetch=0,
            grid=grid,
            in_specs=[
                # logits consumed in their native NCHW layout (no transpose)
                pl.BlockSpec((1, C, TH, W), lambda b, h: (b, 0, h, 0)),
                pl.BlockSpec((1, TH, W), lambda b, h: (b, h, 0)),
            ],
            out_specs=pl.BlockSpec((1, TH, W), lambda b, h: (b, h, 0)),
        ),
        compiler_params=pltpu.CompilerParams(
            # no resident accumulator -> fully parallel grid (v7x: both TCs)
            dimension_semantics=("parallel", "parallel"),
        ),
    )(logits_nchw, target_bhw.astype(jnp.int32))

    loss = jnp.mean(lossmap)        # reduction='mean'; weight=None -> wlossmap == lossmap
    wlossmap = lossmap
    return loss, lossmap, wlossmap


def _reference(logits_nchw, target_bhw, epsilon):
    # pure-JAX reference of weighted_label_smoothed_nll_loss(weight=None)
    lprobs = jax.nn.log_softmax(logits_nchw.astype(jnp.float32), axis=1)
    C = logits_nchw.shape[1]
    tgt = target_bhw[:, None, :, :]
    nll = -jnp.take_along_axis(lprobs, tgt, axis=1)[:, 0]
    smooth = -jnp.sum(lprobs, axis=1)
    lossmap = nll * (1.0 - epsilon) + (epsilon / C) * smooth
    return jnp.mean(lossmap), lossmap


if __name__ == "__main__":
    key = jax.random.PRNGKey(0)
    k1, k2 = jax.random.split(key)

    B, C, H, W = 2, 4, 16, 16
    logits = jax.random.normal(k1, (B, C, H, W), dtype=jnp.float32)
    target = jax.random.randint(k2, (B, H, W), 0, C, dtype=jnp.int32)

    loss, lossmap, wlossmap = hard_balanced_loss(logits, target, smooth_factor=0.05)
    jax.block_until_ready(loss)
    jax.block_until_ready(lossmap)

    ref_loss, ref_map = _reference(logits, target, 0.05)
    assert np.allclose(np.asarray(loss), np.asarray(ref_loss), rtol=1e-5, atol=1e-5)
    assert np.allclose(np.asarray(lossmap), np.asarray(ref_map), rtol=1e-5, atol=1e-5)
    assert np.allclose(np.asarray(wlossmap), np.asarray(ref_map), rtol=1e-5, atol=1e-5)

    # TODO(synk): the pred_statistic / hard_trunc weight-map path depends on an
    # external global PredStatistic object and is not part of the plain forward.
    print("KERNEL_OK")
</pallas_src>

<mosaic_0001>
module attributes {stable_mosaic.version = 11 : i64} {
  func.func @_loss_kernel(%arg0: i32, %arg1: i32, %arg2: memref<1x4x16x16xf32, #tpu.memory_space<vmem>>, %arg3: memref<1x16x16xi32, #tpu.memory_space<vmem>>, %arg4: memref<1x16x16xf32, #tpu.memory_space<vmem>>) attributes {dimension_semantics = [#tpu.dimension_semantics<parallel>, #tpu.dimension_semantics<parallel>], iteration_bounds = array<i64: 2, 1>, scalar_prefetch = 0 : i64, scratch_operands = 0 : i64, tpu.core_type = #tpu.core_type<tc>, window_params = [{transform_indices = @transform_0, window_bounds = array<i64: 1, 4, 16, 16>}, {transform_indices = @transform_1, window_bounds = array<i64: 1, 16, 16>}, {transform_indices = @transform_2, window_bounds = array<i64: 1, 16, 16>}]} {
    %c0 = arith.constant 0 : index
    %c0_0 = arith.constant 0 : index
    %c0_1 = arith.constant 0 : index
    %c0_2 = arith.constant 0 : index
    %0 = vector.load %arg2[%c0, %c0_0, %c0_1, %c0_2] : memref<1x4x16x16xf32, #tpu.memory_space<vmem>>, vector<1x4x16x16xf32>
    %1 = vector.shape_cast %0 : vector<1x4x16x16xf32> to vector<4x16x16xf32>
    %c0_3 = arith.constant 0 : index
    %c0_4 = arith.constant 0 : index
    %c0_5 = arith.constant 0 : index
    %2 = vector.load %arg3[%c0_3, %c0_4, %c0_5] : memref<1x16x16xi32, #tpu.memory_space<vmem>>, vector<1x16x16xi32>
    %3 = vector.shape_cast %2 : vector<1x16x16xi32> to vector<16x16xi32>
    %cst = arith.constant dense<0xFF800000> : vector<16x16xf32>
    %4 = vector.multi_reduction <maximumf>, %1, %cst [0] : vector<4x16x16xf32> to vector<16x16xf32>
    %5 = vector.shape_cast %4 : vector<16x16xf32> to vector<1x16x16xf32>
    %6 = vector.broadcast %5 : vector<1x16x16xf32> to vector<4x16x16xf32>
    %7 = arith.subf %1, %6 : vector<4x16x16xf32>
    %8 = math.exp %7 : vector<4x16x16xf32>
    %cst_6 = arith.constant dense<0.000000e+00> : vector<16x16xf32>
    %9 = vector.multi_reduction <add>, %8, %cst_6 [0] : vector<4x16x16xf32> to vector<16x16xf32>
    %10 = math.log %9 : vector<16x16xf32>
    %11 = tpu.iota {dimensions = array<i32: 0>} : vector<4x16x16xi32>
    %12 = vector.shape_cast %3 : vector<16x16xi32> to vector<1x16x16xi32>
    %13 = vector.broadcast %12 : vector<1x16x16xi32> to vector<4x16x16xi32>
    %14 = arith.cmpi eq, %11, %13 : vector<4x16x16xi32>
    %15 = arith.extui %14 : vector<4x16x16xi1> to vector<4x16x16xi32>
    %16 = arith.sitofp %15 : vector<4x16x16xi32> to vector<4x16x16xf32>
    %cst_7 = arith.constant 0.949999988 : f32
    %17 = vector.broadcast %cst_7 : f32 to vector<4x16x16xf32>
    %18 = arith.mulf %17, %16 : vector<4x16x16xf32>
    %cst_8 = arith.constant 1.250000e-02 : f32
    %19 = vector.broadcast %cst_8 : f32 to vector<4x16x16xf32>
    %20 = arith.addf %18, %19 : vector<4x16x16xf32>
    %21 = arith.mulf %7, %20 : vector<4x16x16xf32>
    %cst_9 = arith.constant dense<0.000000e+00> : vector<16x16xf32>
    %22 = vector.multi_reduction <add>, %21, %cst_9 [0] : vector<4x16x16xf32> to vector<16x16xf32>
    %23 = arith.subf %10, %22 : vector<16x16xf32>
    %c0_10 = arith.constant 0 : index
    %c0_11 = arith.constant 0 : index
    %c0_12 = arith.constant 0 : index
    %24 = vector.load %arg4[%c0_10, %c0_11, %c0_12] : memref<1x16x16xf32, #tpu.memory_space<vmem>>, vector<1x16x16xf32>
    %25 = vector.shape_cast %24 : vector<1x16x16xf32> to vector<16x16xf32>
    %26 = vector.shape_cast %23 : vector<16x16xf32> to vector<1x16x16xf32>
    tpu.vector_store %arg4[%c0_10, %c0_11, %c0_12], %26 {strides = array<i32>} : memref<1x16x16xf32, #tpu.memory_space<vmem>>, vector<1x16x16xf32>,
    return
  }
  func.func @transform_0(%arg0: i32, %arg1: i32) -> (i32, i32, i32, i32) {
    %c0_i32 = arith.constant 0 : i32
    %c0_i32_0 = arith.constant 0 : i32
    %c0_i32_1 = arith.constant 0 : i32
    return %arg0, %c0_i32, %arg1, %c0_i32_0 : i32, i32, i32, i32
  }
  func.func @transform_1(%arg0: i32, %arg1: i32) -> (i32, i32, i32) {
    %c0_i32 = arith.constant 0 : i32
    %c0_i32_0 = arith.constant 0 : i32
    return %arg0, %arg1, %c0_i32 : i32, i32, i32
  }
  func.func @transform_2(%arg0: i32, %arg1: i32) -> (i32, i32, i32) {
    %c0_i32 = arith.constant 0 : i32
    %c0_i32_0 = arith.constant 0 : i32
    return %arg0, %arg1, %c0_i32 : i32, i32, i32
  }
}

</mosaic_0001>

<bundles_post_ra>
// kernel: tpu_custom_call.1
= control target key start
LH: loop header
LB: loop body
LE: loop exit
PB: predicated region body
PF: predicated region fallthrough
CT: control target
= control target key end

     0   :  { %7 = vsyncpa [#allocation3], 0  ;;  %s1018_s0 = inlined_call_operand.hbm [shape: f32[2,4,16,16], index: 0, kind: input, shape index: {}]   ;;  %s1019_s1 = inlined_call_operand.hbm [shape: s32[2,16,16], index: 1, kind: input, shape index: {}]   ;;  %s1020_s2 = inlined_call_operand.hbm [shape: f32[2,16,16], index: 2, kind: output, shape index: {}]  }
   0x1   :  { %9 = vsyncpa [#allocation3 + $0x1], 0 }
   0x2   :  { %10 = vsyncpa [#allocation6], 0 }
   0x3   :  { %12 = vsyncpa [#allocation6 + $0x1], 0 }
   0x4   :  { %13 = vsyncpa [#allocation4], 0 }
   0x5   :  { %15 = vsyncpa [#allocation4 + $0x1], 0  ;;  %s776_s9 = smov 0   ;;  %s778_s10 = smov 0  }
   0x6   :  { %s780_s11 = smov 0   ;;  %s782_s12 = smov 0  }
   0x7   :  { %s784_s13 = smov 0   ;;  %s786_s14 = smov 0  }
   0x8 LB: > { %s489_s15 = sadd.s32 4294967295, %s751_s14   ;;  %s490_s16 = sadd.s32 4294967294, %s751_s14   ;;  %s751_s14 = sphi %s786_s14, %s21_s14   ;;  %s747_s13 = sphi %s784_s13, %s1031_s13   ;;  %s743_s12 = sphi %s782_s12, %s1030_s12   ;;  %s739_s11 = sphi %s780_s11, %s1029_s11   ;;  %s735_s10 = sphi %s778_s10, %s1028_s10   ;;  %s731_s9 = sphi %s776_s9, %s1027_s9  }
   0x9   : > { %s33_s17 = sadd.s32 1, %s747_s13  ;;  %s42_s18 = sadd.s32 1, %s739_s11 }
   0xa   : > { %p35_p0 = scmp.ge.s32.totalorder %s33_s17, 2  ;;  %p49_p1 = scmp.ne.s32.totalorder %s739_s11, %s735_s10 }
   0xb   : > { %p50_p2 = scmp.eq.s32.totalorder %s751_s14, 0  ;;  %p55_p3 = scmp.ne.s32.totalorder %s735_s10, %s731_s9 }
   0xc   : > { %s1033_s17 = smov (%p35_p0, %s33_s17), 0  ;;  %p56_p5 = scmp.eq.s32.totalorder %s489_s15, 0 }
   0xd   : > { %p817_p4 = por %p50_p2, %p49_p1  ;;  %s37_s20 = ssub.s32 %s747_s13, %s1033_s17 }
   0xe   : > { %p109_p6 = scmp.eq.s32.totalorder %s489_s15, 1  ;;  %p40_p7 = scmp.eq.s32.totalorder %s37_s20, 0 }
   0xf   : > { %p823_p8 = por %p56_p5, %p55_p3  ;;  %p115_p10 = scmp.eq.s32.totalorder %s490_s16, 1 }
  0x10   : > { %p827_p9 = por %p109_p6, %p49_p1  ;;  %p492_p12 = scmp.ge.s32.totalorder %s751_s14, 2 }
  0x11   : > { %s832_s23 = scalar_select %p40_p7, %s739_s11, %s42_s18  }
  0x12   : > { %p834_p11 = por %p115_p10, %p55_p3  ;;  %p536_p13 = scmp.lt.s32.totalorder %s751_s14, 2 }
  0x13   : > { %s841_s25 = sand.u32 1, %s739_s11   ;;  %s516_s27 = sshll.u32 %s747_s13, 10 }
  0x14   : > { %s493_s26 = sshll.u32 %s841_s25, 6  ;;  %s147_s30 = scalar_lea.hbm %s1018_s0, %s516_s27 }
  0x15   : > { %s139_s3 = scalar_lea.vmem [#allocation2], %s493_s26  ;;  %p850_p0 = pnand %p536_p13, %p817_p4 }
  0x16   : > { %s148_s4 = sshll.u32 %s139_s3, 4  ;;  %p499_p1 = scmp.ge.s32.totalorder %s751_s14, 1  ;;  %s149_s4 = int_to_ptr.vmem [resolvable:$true] %s148_s4 }
  0x17   : > { %s136_s6 = scalar_lea.sflag [#allocation3], %s841_s25  ;;  %p613_p2 = pneg %p850_p0 }
  0x18   : > { %s624_s7 = scalar_lea.vmem %s149_s4, 1024  ;;  %s753_s8 = smov [#allocation2]  }
  0x19   : > { %p625_p3 = scmp.ne.s32.totalorder %s149_s4, %s624_s7  ;;  %s629_s15 = sshll.u32 %s753_s8, 4  ;;  %s630_s15 = int_to_ptr.vmem [resolvable:$false] %s629_s15 }
  0x1a   : > { %s631_s16 = scalar_lea.vmem %s630_s15, 2048  ;;  %p632_p4 = scmp.lt.s32.totalorder %s149_s4, %s630_s15 }
  0x1b   : > { %p627_p5 = pnand %p625_p3, %p613_p2  ;;  %p633_p7 = scmp.lt.s32.totalorder %s631_s16, %s624_s7 }
  0x1d   : > { %p628_p6 = pneg %p627_p5  ;;  %p634_p10 = por %p633_p7, %p632_p4 }
  0x1f   : > { %p635_p13 = pnand %p634_p10, %p628_p6 }
  0x21   : > { %638 = shalt.err (!%p635_p13)
}
  0x22   : > { %s754_s18 = smov 128   ;;  %s755_s19 = smov 8  }
  0x23   : > { %528 = dma.hbm_to_vmem [thread:$0]  (!%p850_p0), %s147_s30, 1024, %s149_s4, %s136_s6, %s754_s18, %s754_s18, %s755_s19  }
  0x24   : > { %p179_p3 = scmp.lt.s32.totalorder %s751_s14, 3  ;;  %s496_s20 = sshll.u32 %s841_s25, 4 }
  0x25   : > { %s517_s26 = sshll.u32 %s747_s13, 8  ;;  %s162_s7 = scalar_lea.vmem [#allocation5], %s496_s20 }
  0x26   : > { %p868_p5 = pnand %p499_p1, %p179_p3  ;;  %s170_s3 = scalar_lea.hbm %s1019_s1, %s517_s26 }
  0x27   : > { %s171_s8 = sshll.u32 %s162_s7, 4  ;;  %s159_s15 = scalar_lea.sflag [#allocation6], %s841_s25  ;;  %s172_s8 = int_to_ptr.vmem [resolvable:$true] %s171_s8 }
  0x28   : > { %s652_s16 = scalar_lea.vmem %s172_s8, 256  ;;  %s756_s30 = smov [#allocation5]  }
  0x29   : > { %p653_p6 = scmp.ne.s32.totalorder %s172_s8, %s652_s16  ;;  %s657_s4 = sshll.u32 %s756_s30, 4  ;;  %s658_s4 = int_to_ptr.vmem [resolvable:$false] %s657_s4 }
  0x2a   : > { %s659_s6 = scalar_lea.vmem %s658_s4, 512  ;;  %p660_p1 = scmp.lt.s32.totalorder %s172_s8, %s658_s4 }
  0x2b   : > { %p655_p4 = pnand %p653_p6, %p613_p2  ;;  %p661_p10 = scmp.lt.s32.totalorder %s659_s6, %s652_s16 }
  0x2d   : > { %p656_p7 = pneg %p655_p4  ;;  %p662_p13 = por %p661_p10, %p660_p1 }
  0x2f   : > { %p663_p3 = pnand %p662_p13, %p656_p7 }
  0x31   : > { %666 = shalt.err (!%p663_p3)
}
  0x32   : > { %531 = dma.hbm_to_vmem [thread:$0]  (!%p850_p0), %s170_s3, 256, %s172_s8, %s159_s15, %s754_s18, %s754_s18, %s755_s19  }
  0x33   : > { %183 = sbr.rel (%p868_p5) target bundleno = 129 (0x81), region = 28  ;;  %s884_s25 = sand.u32 (!%p868_p5), 1, %s735_s10  }
  0x34   : > { %s500_s20 = sshll.u32 (!%p868_p5), %s884_s25, 6  ;;  %s186_s26 = scalar_lea.sflag (!%p868_p5), [#allocation3], %s884_s25 }
  0x35   : > { %s189_s28 = scalar_lea.vmem (!%p868_p5), [#allocation2], %s500_s20 }
  0x38   : > { %718 = dma.done.wait (%p823_p8), %s186_s26, 1024  }
  0x39   : > { %720 = vsyncadd (%p823_p8), %s186_s26, 4294966272  ;;  %s501_s5 = sshll.u32 %s884_s25, 4  ;;  %s195_s18 = scalar_lea.sflag [#allocation6], %s884_s25 }
  0x3a   : > { %s896_s19 = scalar_lea.vmem [#allocation5], %s501_s5 }
  0x3b   : > { %722 = dma.done.wait (%p823_p8), %s195_s18, 256  }
  0x3c   : > { %724 = vsyncadd (%p823_p8), %s195_s18, 4294967040  ;;  %vm237_vm0 = vcmask 130048   ;;  %v227_v0 = vld [vmem:[%s189_s28] sm:$0xff]  ;;  %v229_v1 = vld [vmem:[%s189_s28 + $0x10] sm:$0xff]  ;;  %v757_v34 = vmov 0.0   ;;  %s223_s21 = scalar_lea.vmem [#allocation7], %s501_s5 }
  0x3d   : > { %v231_v2 = vld [vmem:[%s189_s28 + $0x20] sm:$0xff]  ;;  %v233_v3 = vld [vmem:[%s189_s28 + $0x30] sm:$0xff]  ;;  %v238_v4 = vsel %vm237_vm0, %v227_v0, -inf  ;;  %v239_v5 = vsel %vm237_vm0, %v229_v1, -inf  ;;  %v228_v11 = vld [vmem:[%s189_s28 + $0x8] sm:$0xff]  ;;  %s376_s27 = sshll.u32 %s223_s21, 4  ;;  %s964_s27 = int_to_ptr.vmem [resolvable:$true] %s376_s27 }
  0x3e   : > { %v240_v6 = vsel %vm237_vm0, %v231_v2, -inf  ;;  %v242_v8 = vsel %vm237_vm0, %v233_v3, -inf  ;;  %v232_v12 = vld [vmem:[%s189_s28 + $0x28] sm:$0xff]  ;;  %v230_v17 = vld [vmem:[%s189_s28 + $0x18] sm:$0xff]  ;;  %v245_v19 = vsel %vm237_vm0, %v228_v11, -inf  ;;  %v235_v28 = vld [vmem:[%s896_s19] sm:$0xff] }
  0x3f   : > { %v241_v7 = vmax.f32 %v238_v4, %v240_v6  ;;  %v243_v9 = vmax.f32 %v239_v5, %v242_v8  ;;  %v234_v18 = vld [vmem:[%s189_s28 + $0x38] sm:$0xff]  ;;  %v247_v20 = vsel %vm237_vm0, %v232_v12, -inf  ;;  %v246_v25 = vsel %vm237_vm0, %v230_v17, -inf  ;;  %s518_s29 = sshll.u32 %s743_s12, 8  ;;  %s361_s15 = scalar_lea.sflag [#allocation4], %s884_s25 }
  0x40   : > { %v248_v26 = vmax.f32 %v245_v19, %v247_v20  ;;  %v249_v27 = vsel %vm237_vm0, %v234_v18, -inf  ;;  %vm294_vm1 = vcmp.eq.s32.totalorder %v235_v28, 0  ;;  %vm296_vm2 = vcmp.eq.s32.totalorder %v235_v28, 1  ;;  %v236_v45 = vld [vmem:[%s896_s19 + $0x8] sm:$0xff]  ;;  %s969_s8 = scalar_lea.hbm %s1020_s2, %s518_s29  ;;  %s667_s16 = scalar_lea.vmem %s964_s27, 256 }
  0x41   : > { %v244_v10 = vmax.f32 %v241_v7, %v243_v9  ;;  %v250_v29 = vmax.f32 %v246_v25, %v249_v27  ;;  %vm298_vm3 = vcmp.eq.s32.totalorder %v235_v28, 2  ;;  %v503_v35 = vsel %vm294_vm1, 1.0, %v757_v34  ;;  %p668_p8 = scmp.ne.s32.totalorder %s964_s27, %s667_s16  ;;  %s758_s12 = smov [#allocation7]  }
  0x42   : > { %v505_v36 = vsel %vm296_vm2, 1.0, %v757_v34  ;;  %v318_v42 = vmul.f32 0.95, %v503_v35  ;;  %vm300_vm4 = vcmp.eq.s32.totalorder %v235_v28, 3  ;;  %v507_v43 = vsel %vm298_vm3, 1.0, %v757_v34  ;;  %s671_s30 = sshll.u32 %s758_s12, 4  ;;  %s672_s30 = int_to_ptr.vmem [resolvable:$false] %s671_s30 }
  0x43   : > { %v906_v13 = vsub.f32 %v227_v0, %v244_v10  ;;  %v908_v14 = vsub.f32 %v229_v1, %v244_v10  ;;  %v910_v15 = vsub.f32 %v231_v2, %v244_v10  ;;  %v912_v16 = vsub.f32 %v233_v3, %v244_v10  ;;  %p669_p0 = pnand %p668_p8, %p827_p9  ;;  %s673_s4 = scalar_lea.vmem %s672_s30, 512 }
  0x44   : > { %v251_v30 = vmax.f32 %v248_v26, %v250_v29  ;;  %v320_v44 = vmul.f32 0.95, %v505_v36  ;;  %v509_v49 = vsel %vm300_vm4, 1.0, %v757_v34  ;;  %v322_v50 = vmul.f32 0.95, %v507_v43  ;;  %p674_p5 = scmp.lt.s32.totalorder %s964_s27, %s672_s30  ;;  %p675_p6 = scmp.lt.s32.totalorder %s673_s4, %s667_s16 }
  0x45   : > { %v260_v21 = vmul.f32 1.442695, %v906_v13  ;;  %v264_v22 = vmul.f32 1.442695, %v908_v14  ;;  %v268_v23 = vmul.f32 1.442695, %v910_v15  ;;  %p670_p2 = pneg %p669_p0 }
  0x46   : > { %v272_v24 = vmul.f32 1.442695, %v912_v16  ;;  %v923_v31 = vsub.f32 %v228_v11, %v251_v30  ;;  %v925_v32 = vsub.f32 %v230_v17, %v251_v30  ;;  %v927_v33 = vsub.f32 %v232_v12, %v251_v30  ;;  %p676_p4 = por %p675_p6, %p674_p5 }
  0x47   : > { %591 = vpow2.f32 %v260_v21  ;;  %v929_v37 = vsub.f32 %v234_v18, %v251_v30  ;;  %v326_v51 = vadd.f32 0.0125, %v318_v42  ;;  %v328_v54 = vadd.f32 0.0125, %v320_v44 }
  0x48   : > { %593 = vpow2.f32 %v264_v22  ;;  %v262_v38 = vmul.f32 1.442695, %v923_v31  ;;  %v266_v39 = vmul.f32 1.442695, %v925_v32  ;;  %v270_v40 = vmul.f32 1.442695, %v927_v33  ;;  %p677_p7 = pnand %p676_p4, %p670_p2 }
  0x49   : > { %595 = vpow2.f32 %v268_v23  ;;  %v274_v41 = vmul.f32 1.442695, %v929_v37  ;;  %vm295_vm5 = vcmp.eq.s32.totalorder %v236_v45, 0  ;;  %vm297_vm6 = vcmp.eq.s32.totalorder %v236_v45, 1 }
  0x4a   : > { %597 = vpow2.f32 %v272_v24  ;;  %v324_v59 = vmul.f32 0.95, %v509_v49  ;;  %vm299_vm7 = vcmp.eq.s32.totalorder %v236_v45, 2  ;;  %v504_v61 = vsel %vm295_vm5, 1.0, %v757_v34 }
  0x4b   : > { %599 = vpow2.f32 %v262_v38  ;;  %v506_v62 = vsel %vm297_vm6, 1.0, %v757_v34  ;;  %v330_v63 = vadd.f32 0.0125, %v322_v50  ;;  %v334_v0 = vmul.f32 %v326_v51, %v906_v13 }
  0x4c   : > { %601 = vpow2.f32 %v266_v39  ;;  %v336_v1 = vmul.f32 %v328_v54, %v908_v14  ;;  %v508_v3 = vsel %vm299_vm7, 1.0, %v757_v34  ;;  %v319_v4 = vmul.f32 0.95, %v504_v61 }
  0x4d   : > { %603 = vpow2.f32 %v270_v40  ;;  %v321_v5 = vmul.f32 0.95, %v506_v62  ;;  %v332_v6 = vadd.f32 0.0125, %v324_v59  ;;  %v338_v8 = vmul.f32 %v330_v63, %v910_v15 }
  0x4e   : > { %605 = vpow2.f32 %v274_v41  ;;  %v342_v9 = vsel %vm237_vm0, %v334_v0, 0.0  ;;  %v343_v10 = vsel %vm237_vm0, %v336_v1, 0.0  ;;  %vm301_vm8 = vcmp.eq.s32.totalorder %v236_v45, 3 }
  0x4f   : > { %v323_v13 = vmul.f32 0.95, %v508_v3  ;;  %v327_v18 = vadd.f32 0.0125, %v319_v4  ;;  %v329_v19 = vadd.f32 0.0125, %v321_v5  ;;  %v344_v21 = vadd.f32 %v343_v10, %v342_v9 }
  0x50   : > { %v510_v15 = vsel %vm301_vm8, 1.0, %v757_v34  ;;  %v340_v24 = vmul.f32 %v332_v6, %v912_v16  ;;  %v345_v25 = vsel %vm237_vm0, %v338_v8, 0.0 }
  0x51   : > { %v325_v28 = vmul.f32 0.95, %v510_v15  ;;  %v331_v29 = vadd.f32 0.0125, %v323_v13  ;;  %v335_v30 = vmul.f32 %v327_v18, %v923_v31  ;;  %v337_v35 = vmul.f32 %v329_v19, %v925_v32 }
  0x52   : > { %v346_v36 = vadd.f32 %v345_v25, %v344_v21  ;;  %v347_v39 = vsel %vm237_vm0, %v340_v24, 0.0 }
  0x53   : > { %v333_v34 = vadd.f32 0.0125, %v325_v28  ;;  %v339_v16 = vmul.f32 %v331_v29, %v927_v33  ;;  %v349_v40 = vsel %vm237_vm0, %v335_v30, 0.0  ;;  %v350_v41 = vsel %vm237_vm0, %v337_v35, 0.0 }
  0x54   : > { %v592_v46 = vpop.eup %591  ;;  %v348_v42 = vadd.f32 %v347_v39, %v346_v36  ;;  %v351_v31 = vadd.f32 %v350_v41, %v349_v40 }
  0x55   : > { %v594_v47 = vpop.eup %593  ;;  %v276_v48 = vsel %vm237_vm0, %v592_v46, 0.0  ;;  %v341_v32 = vmul.f32 %v333_v34, %v929_v37  ;;  %v352_v45 = vsel %vm237_vm0, %v339_v16, 0.0 }
  0x56   : > { %v596_v52 = vpop.eup %595  ;;  %v277_v53 = vsel %vm237_vm0, %v594_v47, 0.0  ;;  %v353_v33 = vadd.f32 %v352_v45, %v351_v31 }
  0x57   : > { %v598_v55 = vpop.eup %597  ;;  %v278_v56 = vadd.f32 %v277_v53, %v276_v48  ;;  %v279_v57 = vsel %vm237_vm0, %v596_v52, 0.0  ;;  %v354_v47 = vsel %vm237_vm0, %v341_v32, 0.0 }
  0x58   : > { %v281_v58 = vsel %vm237_vm0, %v598_v55, 0.0  ;;  %v600_v7 = vpop.eup %599  ;;  %v355_v48 = vadd.f32 %v354_v47, %v353_v33 }
  0x59   : > { %v280_v60 = vadd.f32 %v279_v57, %v278_v56  ;;  %v602_v11 = vpop.eup %601  ;;  %v283_v12 = vsel %vm237_vm0, %v600_v7, 0.0 }
  0x5a   : > { %v604_v17 = vpop.eup %603  ;;  %v284_v14 = vsel %vm237_vm0, %v602_v11, 0.0 }
  0x5b   : > { %v282_v2 = vadd.f32 %v281_v58, %v280_v60  ;;  %v606_v20 = vpop.eup %605  ;;  %v285_v22 = vadd.f32 %v284_v14, %v283_v12  ;;  %v286_v23 = vsel %vm237_vm0, %v604_v17, 0.0 }
  0x5c   : > { %v288_v26 = vsel %vm237_vm0, %v606_v20, 0.0 }
  0x5d   : > { %607 = vlog2.f32 %v282_v2  ;;  %v287_v27 = vadd.f32 %v286_v23, %v285_v22 }
  0x5f   : > { %v289_v38 = vadd.f32 %v288_v26, %v287_v27 }
  0x61   : > { %609 = vlog2.f32 %v289_v38 }
  0x6a   : > { %v608_v43 = vpop.eup %607 }
  0x6b   : > { %v291_v44 = vmul.f32 0.6931472, %v608_v43 }
  0x6d   : > { %v356_v46 = vsub.f32 %v291_v44, %v348_v42 }
  0x6e   : > { %v610_v49 = vpop.eup %609 }
  0x6f   : > { %358 = vst.msk [vmem:[%s223_s21] sm:$0xff] %vm237_vm0, %v356_v46  ;;  %v293_v50 = vmul.f32 0.6931472, %v610_v49 }
  0x71   : > { %v357_v37 = vsub.f32 %v293_v50, %v355_v48 }
  0x73   : > { %359 = vst.msk [vmem:[%s223_s21 + $0x8] sm:$0xff] %vm237_vm0, %v357_v37 }
  0x74   : > { %680 = shalt.err (!%p677_p7)
}
  0x75   : > { %s681_s6 = scalar_lea.hbm %s969_s8, 256  ;;  %s685_s28 = scalar_lea.hbm %s1020_s2, 512 }
  0x76   : > { %p682_p1 = scmp.ne.s32.totalorder %s969_s8, %s681_s6  ;;  %p686_p3 = scmp.lt.s32.totalorder %s969_s8, %s1020_s2 }
  0x77   : > { %p687_p8 = scmp.lt.s32.totalorder %s685_s28, %s681_s6 }
  0x78   : > { %p683_p10 = pnand %p682_p1, %p827_p9 }
  0x79   : > { %p688_p0 = por %p687_p8, %p686_p3 }
  0x7a   : > { %p684_p13 = pneg %p683_p10 }
  0x7c   : > { %p689_p2 = pnand %p688_p0, %p684_p13 }
  0x7e   : > { %692 = shalt.err (!%p689_p2)
}
  0x7f   : > { %s759_s19 = smov 128   ;;  %s760_s21 = smov 8  }
  0x80   : > { %523 = dma.vmem_to_hbm [thread:$0]  (%p827_p9), %s964_s27, 256, %s969_s8, %s361_s15, %s759_s19, %s759_s19, %s760_s21  }
  0x81 PF: > { %s391_s29 = sand.u32 1, %s731_s9   ;;  %p533_p5 = pnand %p492_p12, %p834_p11 }
  0x82   : > { %s392_s3 = scalar_lea.sflag [#allocation4], %s391_s29 }
  0x83   : > { %p534_p6 = pneg %p533_p5 }
  0x85   : > { %726 = dma.done.wait (%p534_p6), %s392_s3, 256  }
  0x86   : > { %728 = vsyncadd (%p534_p6), %s392_s3, 4294967040  ;;  %s21_s14 = sadd.s32 1, %s751_s14   ;;  %s1027_s9 = smov %s735_s10 }
  0x87   : > { %p18_p4 = scmp.ge.s32.totalorder %s21_s14, 4   ;;  %s1028_s10 = smov %s739_s11 }
  0x88   : > { %s1029_s11 = smov %s832_s23  ;;  %s1030_s12 = smov %s747_s13 }
  0x89   : > { %s1031_s13 = smov %s1033_s17  ;;  %20 = sbr.rel (!%p18_p4) target bundleno = 8 (0x8), region = 86 }
  0x8e   :  { %397 = vsyncpa [#allocation3], 1 }
  0x8f   :  { %399 = vsyncpa [#allocation3 + $0x1], 1 }
  0x90   :  { %400 = vsyncpa [#allocation6], 1 }
  0x91   :  { %402 = vsyncpa [#allocation6 + $0x1], 1 }
  0x92   :  { %403 = vsyncpa [#allocation4], 1 }
  0x93   :  { %405 = vsyncpa [#allocation4 + $0x1], 1 }

</bundles_post_ra>
